<compile_context>
chip_gen: v5e
topology: v5e:2x2
jax: 0.10.0
libtpu: 0.0.40
codegen_flags: <defaults>
</compile_context>

<pallas_src>
import functools

import jax
import jax.numpy as jnp
from jax.experimental import pallas as pl
from jax.experimental.pallas import tpu as pltpu

EPS = 1e-5  # nn.BatchNorm2d default eps


# ---------------------------------------------------------------------------
# Pass 1 kernel: one output image row of a 3x3 "same" conv + BN statistics.
# ---------------------------------------------------------------------------
def conv_row_kernel(top_ref, mid_ref, bot_ref, w_ref, sc_ref, sh_ref,
                    out_ref, sum_ref, sq_ref, *, apply_input_act):
    """Layout: channels on sublanes, spatial width on lanes.

    top/mid/bot_ref : (1, 1, Cin, Wp)   padded input rows y, y+1, y+2
    w_ref           : (Cout, 9*Cin)     3x3 taps flattened into one wide-K matmul
    sc_ref, sh_ref  : (Cin, 1)          per-channel affine applied to the INPUT
                                        rows (previous layer's BN); unused when
                                        apply_input_act=False
    out_ref         : (1, 1, Cout, W)   raw (pre-BN) conv output row
    sum_ref, sq_ref : (1, Cout, 1)      per-image sum / sum-of-squares,
                                        accumulated across the row axis
    """
    cout = out_ref.shape[2]
    w_out = out_ref.shape[3]
    wp = top_ref.shape[3]

    if apply_input_act:
        # Emulate zero-padding of the *normalized* previous activation:
        # affine + ReLU the raw rows, then zero the halo columns and (at the
        # image borders) the halo rows.
        col = jax.lax.broadcasted_iota(jnp.int32, (1, wp), 1)
        col_mask = jnp.logical_and(col >= 1, col <= w_out).astype(jnp.float32)
        h = pl.program_id(1)
        top_valid = (h > 0).astype(jnp.float32)
        bot_valid = (h < pl.num_programs(1) - 1).astype(jnp.float32)
    else:
        col_mask = top_valid = bot_valid = None

    def load(ref, row_valid):
        v = ref[0, 0]                                    # (Cin, Wp)
        if not apply_input_act:
            return v
        v = jnp.maximum(v * sc_ref[...] + sh_ref[...], 0.0)
        v = v * col_mask
        if row_valid is not None:
            v = v * row_valid
        return v

    rows = (load(top_ref, top_valid),
            load(mid_ref, None),
            load(bot_ref, bot_valid))

    # 9 shifted taps concatenated along K -> a single wide-K MXU matmul.
    taps = jnp.concatenate(
        [rows[ky][:, kx:kx + w_out] for ky in range(3) for kx in range(3)],
        axis=0)                                          # (9*Cin, W)
    acc = jnp.dot(w_ref[...], taps,
                  preferred_element_type=jnp.float32)    # (Cout, W)

    out_ref[0, 0] = acc.astype(out_ref.dtype)

    # Training-mode BN statistics: the stats block stays VMEM-resident across
    # the (arbitrary) row axis and is accumulated in place.
    @pl.when(pl.program_id(1) == 0)
    def _init():
        sum_ref[...] = jnp.zeros_like(sum_ref)
        sq_ref[...] = jnp.zeros_like(sq_ref)

    sum_ref[0] = sum_ref[0] + jnp.sum(acc, axis=1, keepdims=True)
    sq_ref[0] = sq_ref[0] + jnp.sum(acc * acc, axis=1, keepdims=True)


def _conv_rows_pass(xp, w_mat, sc_in, sh_in, *, apply_input_act):
    """Run the row-conv kernel over all (image, row) pairs.

    xp     : (N, H+2, Cin, W+2)  spatially padded input in (N, H, C, W) layout
    w_mat  : (Cout, 9*Cin)
    sc_in, sh_in : (Cin, 1)      affine applied to the input rows (conv2 only)
    returns: raw conv output (N, H, Cout, W), per-image sums (N, Cout, 1) x2.
    """
    n, hp, cin, wp = xp.shape
    h, w = hp - 2, wp - 2
    cout = w_mat.shape[0]

    kernel = functools.partial(conv_row_kernel, apply_input_act=apply_input_act)
    return pl.pallas_call(
        kernel,
        grid=(n, h),
        in_specs=[
            pl.BlockSpec((1, 1, cin, wp), lambda i, j: (i, j, 0, 0)),      # row y
            pl.BlockSpec((1, 1, cin, wp), lambda i, j: (i, j + 1, 0, 0)),  # row y+1
            pl.BlockSpec((1, 1, cin, wp), lambda i, j: (i, j + 2, 0, 0)),  # row y+2
            pl.BlockSpec((cout, 9 * cin), lambda i, j: (0, 0)),
            pl.BlockSpec((cin, 1), lambda i, j: (0, 0)),
            pl.BlockSpec((cin, 1), lambda i, j: (0, 0)),
        ],
        out_specs=[
            pl.BlockSpec((1, 1, cout, w), lambda i, j: (i, j, 0, 0)),
            pl.BlockSpec((1, cout, 1), lambda i, j: (i, 0, 0)),
            pl.BlockSpec((1, cout, 1), lambda i, j: (i, 0, 0)),
        ],
        out_shape=(
            jax.ShapeDtypeStruct((n, h, cout, w), jnp.float32),
            jax.ShapeDtypeStruct((n, cout, 1), jnp.float32),
            jax.ShapeDtypeStruct((n, cout, 1), jnp.float32),
        ),
        compiler_params=pltpu.CompilerParams(
            dimension_semantics=("parallel", "arbitrary")),
    )(xp, xp, xp, w_mat, sc_in, sh_in)


# ---------------------------------------------------------------------------
# Pass 2 kernel: per-channel affine (BN) + ReLU, in place.
# ---------------------------------------------------------------------------
def bn_relu_kernel(x_ref, sc_ref, sh_ref, o_ref):
    x = x_ref[0]                                   # (TH, C, W)
    o_ref[0] = jnp.maximum(x * sc_ref[...] + sh_ref[...], 0.0)


def _row_tile(h, c, w, budget_bytes=2 << 20):
    th = 1
    for cand in range(1, h + 1):
        if h % cand == 0 and cand * c * w * 4 <= budget_bytes:
            th = cand
    return th


def _bn_relu_pass(raw, scale, shift):
    n, h, c, w = raw.shape
    th = _row_tile(h, c, w)
    sc = scale.reshape(c, 1).astype(jnp.float32)
    sh = shift.reshape(c, 1).astype(jnp.float32)
    return pl.pallas_call(
        bn_relu_kernel,
        grid=(n, h // th),
        in_specs=[
            pl.BlockSpec((1, th, c, w), lambda i, j: (i, j, 0, 0)),
            pl.BlockSpec((c, 1), lambda i, j: (0, 0)),
            pl.BlockSpec((c, 1), lambda i, j: (0, 0)),
        ],
        out_specs=pl.BlockSpec((1, th, c, w), lambda i, j: (i, j, 0, 0)),
        out_shape=jax.ShapeDtypeStruct((n, h, c, w), jnp.float32),
        input_output_aliases={0: 0},   # normalize in place over the raw output
        compiler_params=pltpu.CompilerParams(
            dimension_semantics=("parallel", "parallel")),
    )(raw, sc, sh)


def _bn_scale_shift(sums, sumsqs, gamma, beta, count):
    total = jnp.sum(sums[:, :, 0], axis=0)        # (C,)
    total_sq = jnp.sum(sumsqs[:, :, 0], axis=0)   # (C,)
    mean = total / count
    var = total_sq / count - mean * mean          # biased variance (training BN)
    inv = jax.lax.rsqrt(var + EPS)
    scale = gamma * inv
    shift = beta - mean * scale
    return scale, shift


# ---------------------------------------------------------------------------
# Public wrapper: NCHW in / NCHW out, matching the PyTorch module.
# ---------------------------------------------------------------------------
def double_conv(x_nchw, w1, b1, g1, be1, w2, b2, g2, be2):
    """Pallas DoubleConv forward.

    Conv biases b1/b2 are accepted for API parity but not used inside the
    kernels: a per-channel constant added before training-mode BatchNorm is
    exactly cancelled by the mean subtraction.
    """
    del b1, b2
    n, cin, h, w = x_nchw.shape
    c1 = w1.shape[0]
    c2 = w2.shape[0]
    count = n * h * w

    # NCHW -> (N, H, C, W): channels on sublanes, width on lanes.
    x = jnp.transpose(x_nchw, (0, 2, 1, 3)).astype(jnp.float32)
    xp = jnp.pad(x, ((0, 0), (1, 1), (0, 0), (1, 1)))

    # Flatten 3x3 weights into one wide-K matmul operand: (Cout, 9*Cin),
    # K ordered (ky, kx, cin) to match the in-kernel tap concatenation.
    w1m = jnp.transpose(w1, (0, 2, 3, 1)).reshape(c1, 9 * cin).astype(jnp.float32)
    w2m = jnp.transpose(w2, (0, 2, 3, 1)).reshape(c2, 9 * c1).astype(jnp.float32)

    ident_sc = jnp.ones((cin, 1), jnp.float32)
    ident_sh = jnp.zeros((cin, 1), jnp.float32)

    # conv1 pass 1: raw conv + BN statistics.
    raw1, s1, q1 = _conv_rows_pass(xp, w1m, ident_sc, ident_sh,
                                   apply_input_act=False)
    scale1, shift1 = _bn_scale_shift(s1, q1, g1, be1, count)

    # conv2 pass 1: conv1's BN + ReLU is applied to the input rows inside the
    # kernel, so the normalized intermediate never round-trips through HBM.
    raw1p = jnp.pad(raw1, ((0, 0), (1, 1), (0, 0), (1, 1)))
    raw2, s2, q2 = _conv_rows_pass(
        raw1p, w2m,
        scale1.reshape(c1, 1).astype(jnp.float32),
        shift1.reshape(c1, 1).astype(jnp.float32),
        apply_input_act=True)
    scale2, shift2 = _bn_scale_shift(s2, q2, g2, be2, count)

    # conv2 pass 2: BN + ReLU (aliased in place over raw2).
    out = _bn_relu_pass(raw2, scale2, shift2)
    return jnp.transpose(out, (0, 2, 1, 3))       # (N, H, C, W) -> NCHW


# ---------------------------------------------------------------------------
# Pure-JAX reference (lax conv + training-mode BN + ReLU) for validation.
# ---------------------------------------------------------------------------
def ref_double_conv(x, w1, b1, g1, be1, w2, b2, g2, be2):
    def block(x, w, b, g, be):
        y = jax.lax.conv_general_dilated(
            x, w, window_strides=(1, 1), padding=((1, 1), (1, 1)),
            dimension_numbers=("NCHW", "OIHW", "NCHW"))
        y = y + b[None, :, None, None]
        mean = jnp.mean(y, axis=(0, 2, 3), keepdims=True)
        var = jnp.mean((y - mean) ** 2, axis=(0, 2, 3), keepdims=True)
        yn = (y - mean) / jnp.sqrt(var + EPS)
        return jnp.maximum(yn * g[None, :, None, None] + be[None, :, None, None],
                           0.0)
    return block(block(x, w1, b1, g1, be1), w2, b2, g2, be2)


if __name__ == "__main__":
    key = jax.random.PRNGKey(0)
    N, Cin, Cout, H, W = 2, 4, 8, 16, 16

    ks = jax.random.split(key, 9)
    x = jax.random.normal(ks[0], (N, Cin, H, W), jnp.float32)

    # Deterministic synthetic parameters (shapes from nn.Conv2d / nn.BatchNorm2d).
    w1 = jax.random.normal(ks[1], (Cout, Cin, 3, 3), jnp.float32) * (2.0 / (Cin * 9)) ** 0.5
    b1 = jax.random.normal(ks[2], (Cout,), jnp.float32) * 0.1
    g1 = 1.0 + 0.1 * jax.random.normal(ks[3], (Cout,), jnp.float32)
    be1 = 0.1 * jax.random.normal(ks[4], (Cout,), jnp.float32)

    w2 = jax.random.normal(ks[5], (Cout, Cout, 3, 3), jnp.float32) * (2.0 / (Cout * 9)) ** 0.5
    b2 = jax.random.normal(ks[6], (Cout,), jnp.float32) * 0.1
    g2 = 1.0 + 0.1 * jax.random.normal(ks[7], (Cout,), jnp.float32)
    be2 = 0.1 * jax.random.normal(ks[8], (Cout,), jnp.float32)

    out = jax.jit(double_conv)(x, w1, b1, g1, be1, w2, b2, g2, be2)
    out = jax.block_until_ready(out)

    ref = ref_double_conv(x, w1, b1, g1, be1, w2, b2, g2, be2)
    assert out.shape == (N, Cout, H, W)
    err = float(jnp.max(jnp.abs(out - ref)))
    assert jnp.allclose(out, ref, atol=1e-3, rtol=1e-3), f"mismatch vs reference, max abs err={err}"

    print("KERNEL_OK")
</pallas_src>

<mosaic_0001>
module attributes {stable_mosaic.version = 11 : i64} {
  func.func @conv_row_kernel(%arg0: i32, %arg1: i32, %arg2: memref<1x1x8x18xf32, #tpu.memory_space<vmem>>, %arg3: memref<1x1x8x18xf32, #tpu.memory_space<vmem>>, %arg4: memref<1x1x8x18xf32, #tpu.memory_space<vmem>>, %arg5: memref<8x72xf32, #tpu.memory_space<vmem>>, %arg6: memref<8x1xf32, #tpu.memory_space<vmem>>, %arg7: memref<8x1xf32, #tpu.memory_space<vmem>>, %arg8: memref<1x1x8x16xf32, #tpu.memory_space<vmem>>, %arg9: memref<1x8x1xf32, #tpu.memory_space<vmem>>, %arg10: memref<1x8x1xf32, #tpu.memory_space<vmem>>) attributes {dimension_semantics = [#tpu.dimension_semantics<parallel>, #tpu.dimension_semantics<arbitrary>], iteration_bounds = array<i64: 2, 16>, scalar_prefetch = 0 : i64, scratch_operands = 0 : i64, tpu.core_type = #tpu.core_type<tc>, window_params = [{transform_indices = @transform_0, window_bounds = array<i64: 1, 1, 8, 18>}, {transform_indices = @transform_1, window_bounds = array<i64: 1, 1, 8, 18>}, {transform_indices = @transform_2, window_bounds = array<i64: 1, 1, 8, 18>}, {pipeline_mode = #tpu.pipeline_mode<synchronous>, transform_indices = @transform_3, window_bounds = array<i64: 8, 72>}, {pipeline_mode = #tpu.pipeline_mode<synchronous>, transform_indices = @transform_4, window_bounds = array<i64: 8, 1>}, {pipeline_mode = #tpu.pipeline_mode<synchronous>, transform_indices = @transform_5, window_bounds = array<i64: 8, 1>}, {transform_indices = @transform_6, window_bounds = array<i64: 1, 1, 8, 16>}, {transform_indices = @transform_7, window_bounds = array<i64: 1, 8, 1>}, {transform_indices = @transform_8, window_bounds = array<i64: 1, 8, 1>}]} {
    %0 = tpu.iota {dimensions = array<i32: 1>} : vector<1x18xi32>
    %c1_i32 = arith.constant 1 : i32
    %1 = vector.broadcast %c1_i32 : i32 to vector<1x18xi32>
    %2 = arith.cmpi sge, %0, %1 : vector<1x18xi32>
    %c16_i32 = arith.constant 16 : i32
    %3 = vector.broadcast %c16_i32 : i32 to vector<1x18xi32>
    %4 = arith.cmpi sle, %0, %3 : vector<1x18xi32>
    %5 = arith.andi %2, %4 : vector<1x18xi1>
    %6 = arith.extui %5 : vector<1x18xi1> to vector<1x18xi32>
    %7 = arith.sitofp %6 : vector<1x18xi32> to vector<1x18xf32>
    %c0_i32 = arith.constant 0 : i32
    %8 = arith.cmpi sgt, %arg1, %c0_i32 : i32
    %9 = arith.extui %8 : i1 to i32
    %10 = arith.sitofp %9 : i32 to f32
    %c15_i32 = arith.constant 15 : i32
    %11 = arith.cmpi slt, %arg1, %c15_i32 : i32
    %12 = arith.extui %11 : i1 to i32
    %13 = arith.sitofp %12 : i32 to f32
    %c0 = arith.constant 0 : index
    %c0_0 = arith.constant 0 : index
    %c0_1 = arith.constant 0 : index
    %c0_2 = arith.constant 0 : index
    %14 = vector.load %arg2[%c0, %c0_0, %c0_1, %c0_2] : memref<1x1x8x18xf32, #tpu.memory_space<vmem>>, vector<1x1x8x18xf32>
    %15 = vector.shape_cast %14 : vector<1x1x8x18xf32> to vector<8x18xf32>
    %c0_3 = arith.constant 0 : index
    %c0_4 = arith.constant 0 : index
    %16 = vector.load %arg6[%c0_3, %c0_4] : memref<8x1xf32, #tpu.memory_space<vmem>>, vector<8x1xf32>
    %17 = vector.broadcast %16 : vector<8x1xf32> to vector<8x18xf32>
    %18 = arith.mulf %15, %17 : vector<8x18xf32>
    %c0_5 = arith.constant 0 : index
    %c0_6 = arith.constant 0 : index
    %19 = vector.load %arg7[%c0_5, %c0_6] : memref<8x1xf32, #tpu.memory_space<vmem>>, vector<8x1xf32>
    %20 = vector.broadcast %19 : vector<8x1xf32> to vector<8x18xf32>
    %21 = arith.addf %18, %20 : vector<8x18xf32>
    %cst = arith.constant 0.000000e+00 : f32
    %22 = vector.broadcast %cst : f32 to vector<8x18xf32>
    %23 = arith.maximumf %21, %22 : vector<8x18xf32>
    %24 = vector.broadcast %7 : vector<1x18xf32> to vector<8x18xf32>
    %25 = arith.mulf %23, %24 : vector<8x18xf32>
    %26 = vector.broadcast %10 : f32 to vector<8x18xf32>
    %27 = arith.mulf %25, %26 : vector<8x18xf32>
    %c0_7 = arith.constant 0 : index
    %c0_8 = arith.constant 0 : index
    %c0_9 = arith.constant 0 : index
    %c0_10 = arith.constant 0 : index
    %28 = vector.load %arg3[%c0_7, %c0_8, %c0_9, %c0_10] : memref<1x1x8x18xf32, #tpu.memory_space<vmem>>, vector<1x1x8x18xf32>
    %29 = vector.shape_cast %28 : vector<1x1x8x18xf32> to vector<8x18xf32>
    %c0_11 = arith.constant 0 : index
    %c0_12 = arith.constant 0 : index
    %30 = vector.load %arg6[%c0_11, %c0_12] : memref<8x1xf32, #tpu.memory_space<vmem>>, vector<8x1xf32>
    %31 = vector.broadcast %30 : vector<8x1xf32> to vector<8x18xf32>
    %32 = arith.mulf %29, %31 : vector<8x18xf32>
    %c0_13 = arith.constant 0 : index
    %c0_14 = arith.constant 0 : index
    %33 = vector.load %arg7[%c0_13, %c0_14] : memref<8x1xf32, #tpu.memory_space<vmem>>, vector<8x1xf32>
    %34 = vector.broadcast %33 : vector<8x1xf32> to vector<8x18xf32>
    %35 = arith.addf %32, %34 : vector<8x18xf32>
    %cst_15 = arith.constant 0.000000e+00 : f32
    %36 = vector.broadcast %cst_15 : f32 to vector<8x18xf32>
    %37 = arith.maximumf %35, %36 : vector<8x18xf32>
    %38 = vector.broadcast %7 : vector<1x18xf32> to vector<8x18xf32>
    %39 = arith.mulf %37, %38 : vector<8x18xf32>
    %c0_16 = arith.constant 0 : index
    %c0_17 = arith.constant 0 : index
    %c0_18 = arith.constant 0 : index
    %c0_19 = arith.constant 0 : index
    %40 = vector.load %arg4[%c0_16, %c0_17, %c0_18, %c0_19] : memref<1x1x8x18xf32, #tpu.memory_space<vmem>>, vector<1x1x8x18xf32>
    %41 = vector.shape_cast %40 : vector<1x1x8x18xf32> to vector<8x18xf32>
    %c0_20 = arith.constant 0 : index
    %c0_21 = arith.constant 0 : index
    %42 = vector.load %arg6[%c0_20, %c0_21] : memref<8x1xf32, #tpu.memory_space<vmem>>, vector<8x1xf32>
    %43 = vector.broadcast %42 : vector<8x1xf32> to vector<8x18xf32>
    %44 = arith.mulf %41, %43 : vector<8x18xf32>
    %c0_22 = arith.constant 0 : index
    %c0_23 = arith.constant 0 : index
    %45 = vector.load %arg7[%c0_22, %c0_23] : memref<8x1xf32, #tpu.memory_space<vmem>>, vector<8x1xf32>
    %46 = vector.broadcast %45 : vector<8x1xf32> to vector<8x18xf32>
    %47 = arith.addf %44, %46 : vector<8x18xf32>
    %cst_24 = arith.constant 0.000000e+00 : f32
    %48 = vector.broadcast %cst_24 : f32 to vector<8x18xf32>
    %49 = arith.maximumf %47, %48 : vector<8x18xf32>
    %50 = vector.broadcast %7 : vector<1x18xf32> to vector<8x18xf32>
    %51 = arith.mulf %49, %50 : vector<8x18xf32>
    %52 = vector.broadcast %13 : f32 to vector<8x18xf32>
    %53 = arith.mulf %51, %52 : vector<8x18xf32>
    %54 = vector.extract_strided_slice %27 {offsets = [0, 0], sizes = [8, 16], strides = [1, 1]} : vector<8x18xf32> to vector<8x16xf32>
    %55 = vector.extract_strided_slice %27 {offsets = [0, 1], sizes = [8, 16], strides = [1, 1]} : vector<8x18xf32> to vector<8x16xf32>
    %56 = vector.extract_strided_slice %27 {offsets = [0, 2], sizes = [8, 16], strides = [1, 1]} : vector<8x18xf32> to vector<8x16xf32>
    %57 = vector.extract_strided_slice %39 {offsets = [0, 0], sizes = [8, 16], strides = [1, 1]} : vector<8x18xf32> to vector<8x16xf32>
    %58 = vector.extract_strided_slice %39 {offsets = [0, 1], sizes = [8, 16], strides = [1, 1]} : vector<8x18xf32> to vector<8x16xf32>
    %59 = vector.extract_strided_slice %39 {offsets = [0, 2], sizes = [8, 16], strides = [1, 1]} : vector<8x18xf32> to vector<8x16xf32>
    %60 = vector.extract_strided_slice %53 {offsets = [0, 0], sizes = [8, 16], strides = [1, 1]} : vector<8x18xf32> to vector<8x16xf32>
    %61 = vector.extract_strided_slice %53 {offsets = [0, 1], sizes = [8, 16], strides = [1, 1]} : vector<8x18xf32> to vector<8x16xf32>
    %62 = vector.extract_strided_slice %53 {offsets = [0, 2], sizes = [8, 16], strides = [1, 1]} : vector<8x18xf32> to vector<8x16xf32>
    %63 = tpu.concatenate %54, %55, %56, %57, %58, %59, %60, %61, %62 in 0 : vector<8x16xf32>, vector<8x16xf32>, vector<8x16xf32>, vector<8x16xf32>, vector<8x16xf32>, vector<8x16xf32>, vector<8x16xf32>, vector<8x16xf32>, vector<8x16xf32> -> vector<72x16xf32>
    %c0_25 = arith.constant 0 : index
    %c0_26 = arith.constant 0 : index
    %64 = vector.load %arg5[%c0_25, %c0_26] : memref<8x72xf32, #tpu.memory_space<vmem>>, vector<8x72xf32>
    %cst_27 = arith.constant dense<0.000000e+00> : vector<8x16xf32>
    %65 = tpu.matmul %64, %63, %cst_27 {dimension_numbers = #tpu.dot_dimension_numbers<[1], [0], [0], [1], [0, 0, 1, 1], [], []>} : vector<8x72xf32>, vector<72x16xf32>, vector<8x16xf32> -> vector<8x16xf32>
    %c0_28 = arith.constant 0 : index
    %c0_29 = arith.constant 0 : index
    %c0_30 = arith.constant 0 : index
    %c0_31 = arith.constant 0 : index
    %66 = vector.load %arg8[%c0_28, %c0_29, %c0_30, %c0_31] : memref<1x1x8x16xf32, #tpu.memory_space<vmem>>, vector<1x1x8x16xf32>
    %67 = vector.shape_cast %66 : vector<1x1x8x16xf32> to vector<8x16xf32>
    %68 = vector.shape_cast %65 : vector<8x16xf32> to vector<1x1x8x16xf32>
    tpu.vector_store %arg8[%c0_28, %c0_29, %c0_30, %c0_31], %68 {strides = array<i32>} : memref<1x1x8x16xf32, #tpu.memory_space<vmem>>, vector<1x1x8x16xf32>,
    %c0_i32_32 = arith.constant 0 : i32
    %69 = arith.cmpi eq, %arg1, %c0_i32_32 : i32
    %70 = arith.extui %69 : i1 to i32
    %c0_i32_33 = arith.constant 0 : i32
    %71 = arith.cmpi ne, %70, %c0_i32_33 : i32
    scf.if %71 {
      %cst_48 = arith.constant 0.000000e+00 : f32
      %89 = vector.broadcast %cst_48 : f32 to vector<1x8x1xf32>
      %c0_49 = arith.constant 0 : index
      %c0_50 = arith.constant 0 : index
      %c0_51 = arith.constant 0 : index
      %90 = vector.load %arg9[%c0_49, %c0_50, %c0_51] : memref<1x8x1xf32, #tpu.memory_space<vmem>>, vector<1x8x1xf32>
      tpu.vector_store %arg9[%c0_49, %c0_50, %c0_51], %89 {strides = array<i32>} : memref<1x8x1xf32, #tpu.memory_space<vmem>>, vector<1x8x1xf32>,
      %cst_52 = arith.constant 0.000000e+00 : f32
      %91 = vector.broadcast %cst_52 : f32 to vector<1x8x1xf32>
      %c0_53 = arith.constant 0 : index
      %c0_54 = arith.constant 0 : index
      %c0_55 = arith.constant 0 : index
      %92 = vector.load %arg10[%c0_53, %c0_54, %c0_55] : memref<1x8x1xf32, #tpu.memory_space<vmem>>, vector<1x8x1xf32>
      tpu.vector_store %arg10[%c0_53, %c0_54, %c0_55], %91 {strides = array<i32>} : memref<1x8x1xf32, #tpu.memory_space<vmem>>, vector<1x8x1xf32>,
    } else {
    }
    %c0_34 = arith.constant 0 : index
    %c0_35 = arith.constant 0 : index
    %c0_36 = arith.constant 0 : index
    %72 = vector.load %arg9[%c0_34, %c0_35, %c0_36] : memref<1x8x1xf32, #tpu.memory_space<vmem>>, vector<1x8x1xf32>
    %73 = vector.shape_cast %72 : vector<1x8x1xf32> to vector<8x1xf32>
    %cst_37 = arith.constant dense<0.000000e+00> : vector<8xf32>
    %74 = vector.multi_reduction <add>, %65, %cst_37 [1] : vector<8x16xf32> to vector<8xf32>
    %75 = vector.shape_cast %74 : vector<8xf32> to vector<8x1xf32>
    %76 = arith.addf %73, %75 : vector<8x1xf32>
    %c0_38 = arith.constant 0 : index
    %c0_39 = arith.constant 0 : index
    %c0_40 = arith.constant 0 : index
    %77 = vector.load %arg9[%c0_38, %c0_39, %c0_40] : memref<1x8x1xf32, #tpu.memory_space<vmem>>, vector<1x8x1xf32>
    %78 = vector.shape_cast %77 : vector<1x8x1xf32> to vector<8x1xf32>
    %79 = vector.shape_cast %76 : vector<8x1xf32> to vector<1x8x1xf32>
    tpu.vector_store %arg9[%c0_38, %c0_39, %c0_40], %79 {strides = array<i32>} : memref<1x8x1xf32, #tpu.memory_space<vmem>>, vector<1x8x1xf32>,
    %c0_41 = arith.constant 0 : index
    %c0_42 = arith.constant 0 : index
    %c0_43 = arith.constant 0 : index
    %80 = vector.load %arg10[%c0_41, %c0_42, %c0_43] : memref<1x8x1xf32, #tpu.memory_space<vmem>>, vector<1x8x1xf32>
    %81 = vector.shape_cast %80 : vector<1x8x1xf32> to vector<8x1xf32>
    %82 = arith.mulf %65, %65 : vector<8x16xf32>
    %cst_44 = arith.constant dense<0.000000e+00> : vector<8xf32>
    %83 = vector.multi_reduction <add>, %82, %cst_44 [1] : vector<8x16xf32> to vector<8xf32>
    %84 = vector.shape_cast %83 : vector<8xf32> to vector<8x1xf32>
    %85 = arith.addf %81, %84 : vector<8x1xf32>
    %c0_45 = arith.constant 0 : index
    %c0_46 = arith.constant 0 : index
    %c0_47 = arith.constant 0 : index
    %86 = vector.load %arg10[%c0_45, %c0_46, %c0_47] : memref<1x8x1xf32, #tpu.memory_space<vmem>>, vector<1x8x1xf32>
    %87 = vector.shape_cast %86 : vector<1x8x1xf32> to vector<8x1xf32>
    %88 = vector.shape_cast %85 : vector<8x1xf32> to vector<1x8x1xf32>
    tpu.vector_store %arg10[%c0_45, %c0_46, %c0_47], %88 {strides = array<i32>} : memref<1x8x1xf32, #tpu.memory_space<vmem>>, vector<1x8x1xf32>,
    return
  }
  func.func @transform_0(%arg0: i32, %arg1: i32) -> (i32, i32, i32, i32) {
    %c0_i32 = arith.constant 0 : i32
    %c0_i32_0 = arith.constant 0 : i32
    %c0_i32_1 = arith.constant 0 : i32
    return %arg0, %arg1, %c0_i32, %c0_i32_0 : i32, i32, i32, i32
  }
  func.func @transform_1(%arg0: i32, %arg1: i32) -> (i32, i32, i32, i32) {
    %c1_i32 = arith.constant 1 : i32
    %0 = arith.addi %arg1, %c1_i32 : i32
    %c0_i32 = arith.constant 0 : i32
    %c0_i32_0 = arith.constant 0 : i32
    %c0_i32_1 = arith.constant 0 : i32
    return %arg0, %0, %c0_i32, %c0_i32_0 : i32, i32, i32, i32
  }
  func.func @transform_2(%arg0: i32, %arg1: i32) -> (i32, i32, i32, i32) {
    %c2_i32 = arith.constant 2 : i32
    %0 = arith.addi %arg1, %c2_i32 : i32
    %c0_i32 = arith.constant 0 : i32
    %c0_i32_0 = arith.constant 0 : i32
    %c0_i32_1 = arith.constant 0 : i32
    return %arg0, %0, %c0_i32, %c0_i32_0 : i32, i32, i32, i32
  }
  func.func @transform_3(%arg0: i32, %arg1: i32) -> (i32, i32) {
    %c0_i32 = arith.constant 0 : i32
    %c0_i32_0 = arith.constant 0 : i32
    %c0_i32_1 = arith.constant 0 : i32
    return %c0_i32, %c0_i32_0 : i32, i32
  }
  func.func @transform_4(%arg0: i32, %arg1: i32) -> (i32, i32) {
    %c0_i32 = arith.constant 0 : i32
    %c0_i32_0 = arith.constant 0 : i32
    %c0_i32_1 = arith.constant 0 : i32
    return %c0_i32, %c0_i32_0 : i32, i32
  }
  func.func @transform_5(%arg0: i32, %arg1: i32) -> (i32, i32) {
    %c0_i32 = arith.constant 0 : i32
    %c0_i32_0 = arith.constant 0 : i32
    %c0_i32_1 = arith.constant 0 : i32
    return %c0_i32, %c0_i32_0 : i32, i32
  }
  func.func @transform_6(%arg0: i32, %arg1: i32) -> (i32, i32, i32, i32) {
    %c0_i32 = arith.constant 0 : i32
    %c0_i32_0 = arith.constant 0 : i32
    %c0_i32_1 = arith.constant 0 : i32
    return %arg0, %arg1, %c0_i32, %c0_i32_0 : i32, i32, i32, i32
  }
  func.func @transform_7(%arg0: i32, %arg1: i32) -> (i32, i32, i32) {
    %c0_i32 = arith.constant 0 : i32
    %c0_i32_0 = arith.constant 0 : i32
    %c0_i32_1 = arith.constant 0 : i32
    return %arg0, %c0_i32, %c0_i32_0 : i32, i32, i32
  }
  func.func @transform_8(%arg0: i32, %arg1: i32) -> (i32, i32, i32) {
    %c0_i32 = arith.constant 0 : i32
    %c0_i32_0 = arith.constant 0 : i32
    %c0_i32_1 = arith.constant 0 : i32
    return %arg0, %c0_i32, %c0_i32_0 : i32, i32, i32
  }
}

module attributes {stable_mosaic.version = 11 : i64} {
  func.func @bn_relu_kernel(%arg0: i32, %arg1: i32, %arg2: memref<1x16x8x16xf32, #tpu.memory_space<vmem>>, %arg3: memref<8x1xf32, #tpu.memory_space<vmem>>, %arg4: memref<8x1xf32, #tpu.memory_space<vmem>>, %arg5: memref<1x16x8x16xf32, #tpu.memory_space<vmem>>) attributes {dimension_semantics = [#tpu.dimension_semantics<parallel>, #tpu.dimension_semantics<parallel>], iteration_bounds = array<i64: 2, 1>, scalar_prefetch = 0 : i64, scratch_operands = 0 : i64, tpu.core_type = #tpu.core_type<tc>, window_params = [{transform_indices = @transform_0, window_bounds = array<i64: 1, 16, 8, 16>}, {pipeline_mode = #tpu.pipeline_mode<synchronous>, transform_indices = @transform_1, window_bounds = array<i64: 8, 1>}, {pipeline_mode = #tpu.pipeline_mode<synchronous>, transform_indices = @transform_2, window_bounds = array<i64: 8, 1>}, {transform_indices = @transform_3, window_bounds = array<i64: 1, 16, 8, 16>}]} {
    %c0 = arith.constant 0 : index
    %c0_0 = arith.constant 0 : index
    %c0_1 = arith.constant 0 : index
    %c0_2 = arith.constant 0 : index
    %0 = vector.load %arg2[%c0, %c0_0, %c0_1, %c0_2] : memref<1x16x8x16xf32, #tpu.memory_space<vmem>>, vector<1x16x8x16xf32>
    %1 = vector.shape_cast %0 : vector<1x16x8x16xf32> to vector<16x8x16xf32>
    %c0_3 = arith.constant 0 : index
    %c0_4 = arith.constant 0 : index
    %2 = vector.load %arg3[%c0_3, %c0_4] : memref<8x1xf32, #tpu.memory_space<vmem>>, vector<8x1xf32>
    %3 = vector.shape_cast %2 : vector<8x1xf32> to vector<1x8x1xf32>
    %4 = vector.broadcast %3 : vector<1x8x1xf32> to vector<16x8x16xf32>
    %5 = arith.mulf %1, %4 : vector<16x8x16xf32>
    %c0_5 = arith.constant 0 : index
    %c0_6 = arith.constant 0 : index
    %6 = vector.load %arg4[%c0_5, %c0_6] : memref<8x1xf32, #tpu.memory_space<vmem>>, vector<8x1xf32>
    %7 = vector.shape_cast %6 : vector<8x1xf32> to vector<1x8x1xf32>
    %8 = vector.broadcast %7 : vector<1x8x1xf32> to vector<16x8x16xf32>
    %9 = arith.addf %5, %8 : vector<16x8x16xf32>
    %cst = arith.constant 0.000000e+00 : f32
    %10 = vector.broadcast %cst : f32 to vector<16x8x16xf32>
    %11 = arith.maximumf %9, %10 : vector<16x8x16xf32>
    %c0_7 = arith.constant 0 : index
    %c0_8 = arith.constant 0 : index
    %c0_9 = arith.constant 0 : index
    %c0_10 = arith.constant 0 : index
    %12 = vector.load %arg5[%c0_7, %c0_8, %c0_9, %c0_10] : memref<1x16x8x16xf32, #tpu.memory_space<vmem>>, vector<1x16x8x16xf32>
    %13 = vector.shape_cast %12 : vector<1x16x8x16xf32> to vector<16x8x16xf32>
    %14 = vector.shape_cast %11 : vector<16x8x16xf32> to vector<1x16x8x16xf32>
    tpu.vector_store %arg5[%c0_7, %c0_8, %c0_9, %c0_10], %14 {strides = array<i32>} : memref<1x16x8x16xf32, #tpu.memory_space<vmem>>, vector<1x16x8x16xf32>,
    return
  }
  func.func @transform_0(%arg0: i32, %arg1: i32) -> (i32, i32, i32, i32) {
    %c0_i32 = arith.constant 0 : i32
    %c0_i32_0 = arith.constant 0 : i32
    %c0_i32_1 = arith.constant 0 : i32
    return %arg0, %arg1, %c0_i32, %c0_i32_0 : i32, i32, i32, i32
  }
  func.func @transform_1(%arg0: i32, %arg1: i32) -> (i32, i32) {
    %c0_i32 = arith.constant 0 : i32
    %c0_i32_0 = arith.constant 0 : i32
    %c0_i32_1 = arith.constant 0 : i32
    return %c0_i32, %c0_i32_0 : i32, i32
  }
  func.func @transform_2(%arg0: i32, %arg1: i32) -> (i32, i32) {
    %c0_i32 = arith.constant 0 : i32
    %c0_i32_0 = arith.constant 0 : i32
    %c0_i32_1 = arith.constant 0 : i32
    return %c0_i32, %c0_i32_0 : i32, i32
  }
  func.func @transform_3(%arg0: i32, %arg1: i32) -> (i32, i32, i32, i32) {
    %c0_i32 = arith.constant 0 : i32
    %c0_i32_0 = arith.constant 0 : i32
    %c0_i32_1 = arith.constant 0 : i32
    return %arg0, %arg1, %c0_i32, %c0_i32_0 : i32, i32, i32, i32
  }
}

module attributes {stable_mosaic.version = 11 : i64} {
  func.func @conv_row_kernel(%arg0: i32, %arg1: i32, %arg2: memref<1x1x4x18xf32, #tpu.memory_space<vmem>>, %arg3: memref<1x1x4x18xf32, #tpu.memory_space<vmem>>, %arg4: memref<1x1x4x18xf32, #tpu.memory_space<vmem>>, %arg5: memref<8x36xf32, #tpu.memory_space<vmem>>, %arg6: memref<4x1xf32, #tpu.memory_space<vmem>>, %arg7: memref<4x1xf32, #tpu.memory_space<vmem>>, %arg8: memref<1x1x8x16xf32, #tpu.memory_space<vmem>>, %arg9: memref<1x8x1xf32, #tpu.memory_space<vmem>>, %arg10: memref<1x8x1xf32, #tpu.memory_space<vmem>>) attributes {dimension_semantics = [#tpu.dimension_semantics<parallel>, #tpu.dimension_semantics<arbitrary>], iteration_bounds = array<i64: 2, 16>, scalar_prefetch = 0 : i64, scratch_operands = 0 : i64, tpu.core_type = #tpu.core_type<tc>, window_params = [{transform_indices = @transform_0, window_bounds = array<i64: 1, 1, 4, 18>}, {transform_indices = @transform_1, window_bounds = array<i64: 1, 1, 4, 18>}, {transform_indices = @transform_2, window_bounds = array<i64: 1, 1, 4, 18>}, {pipeline_mode = #tpu.pipeline_mode<synchronous>, transform_indices = @transform_3, window_bounds = array<i64: 8, 36>}, {pipeline_mode = #tpu.pipeline_mode<synchronous>, transform_indices = @transform_4, window_bounds = array<i64: 4, 1>}, {pipeline_mode = #tpu.pipeline_mode<synchronous>, transform_indices = @transform_5, window_bounds = array<i64: 4, 1>}, {transform_indices = @transform_6, window_bounds = array<i64: 1, 1, 8, 16>}, {transform_indices = @transform_7, window_bounds = array<i64: 1, 8, 1>}, {transform_indices = @transform_8, window_bounds = array<i64: 1, 8, 1>}]} {
    %c0 = arith.constant 0 : index
    %c0_0 = arith.constant 0 : index
    %c0_1 = arith.constant 0 : index
    %c0_2 = arith.constant 0 : index
    %0 = vector.load %arg2[%c0, %c0_0, %c0_1, %c0_2] : memref<1x1x4x18xf32, #tpu.memory_space<vmem>>, vector<1x1x4x18xf32>
    %1 = vector.shape_cast %0 : vector<1x1x4x18xf32> to vector<4x18xf32>
    %c0_3 = arith.constant 0 : index
    %c0_4 = arith.constant 0 : index
    %c0_5 = arith.constant 0 : index
    %c0_6 = arith.constant 0 : index
    %2 = vector.load %arg3[%c0_3, %c0_4, %c0_5, %c0_6] : memref<1x1x4x18xf32, #tpu.memory_space<vmem>>, vector<1x1x4x18xf32>
    %3 = vector.shape_cast %2 : vector<1x1x4x18xf32> to vector<4x18xf32>
    %c0_7 = arith.constant 0 : index
    %c0_8 = arith.constant 0 : index
    %c0_9 = arith.constant 0 : index
    %c0_10 = arith.constant 0 : index
    %4 = vector.load %arg4[%c0_7, %c0_8, %c0_9, %c0_10] : memref<1x1x4x18xf32, #tpu.memory_space<vmem>>, vector<1x1x4x18xf32>
    %5 = vector.shape_cast %4 : vector<1x1x4x18xf32> to vector<4x18xf32>
    %6 = vector.extract_strided_slice %1 {offsets = [0, 0], sizes = [4, 16], strides = [1, 1]} : vector<4x18xf32> to vector<4x16xf32>
    %7 = vector.extract_strided_slice %1 {offsets = [0, 1], sizes = [4, 16], strides = [1, 1]} : vector<4x18xf32> to vector<4x16xf32>
    %8 = vector.extract_strided_slice %1 {offsets = [0, 2], sizes = [4, 16], strides = [1, 1]} : vector<4x18xf32> to vector<4x16xf32>
    %9 = vector.extract_strided_slice %3 {offsets = [0, 0], sizes = [4, 16], strides = [1, 1]} : vector<4x18xf32> to vector<4x16xf32>
    %10 = vector.extract_strided_slice %3 {offsets = [0, 1], sizes = [4, 16], strides = [1, 1]} : vector<4x18xf32> to vector<4x16xf32>
    %11 = vector.extract_strided_slice %3 {offsets = [0, 2], sizes = [4, 16], strides = [1, 1]} : vector<4x18xf32> to vector<4x16xf32>
    %12 = vector.extract_strided_slice %5 {offsets = [0, 0], sizes = [4, 16], strides = [1, 1]} : vector<4x18xf32> to vector<4x16xf32>
    %13 = vector.extract_strided_slice %5 {offsets = [0, 1], sizes = [4, 16], strides = [1, 1]} : vector<4x18xf32> to vector<4x16xf32>
    %14 = vector.extract_strided_slice %5 {offsets = [0, 2], sizes = [4, 16], strides = [1, 1]} : vector<4x18xf32> to vector<4x16xf32>
    %15 = tpu.concatenate %6, %7, %8, %9, %10, %11, %12, %13, %14 in 0 : vector<4x16xf32>, vector<4x16xf32>, vector<4x16xf32>, vector<4x16xf32>, vector<4x16xf32>, vector<4x16xf32>, vector<4x16xf32>, vector<4x16xf32>, vector<4x16xf32> -> vector<36x16xf32>
    %c0_11 = arith.constant 0 : index
    %c0_12 = arith.constant 0 : index
    %16 = vector.load %arg5[%c0_11, %c0_12] : memref<8x36xf32, #tpu.memory_space<vmem>>, vector<8x36xf32>
    %cst = arith.constant dense<0.000000e+00> : vector<8x16xf32>
    %17 = tpu.matmul %16, %15, %cst {dimension_numbers = #tpu.dot_dimension_numbers<[1], [0], [0], [1], [0, 0, 1, 1], [], []>} : vector<8x36xf32>, vector<36x16xf32>, vector<8x16xf32> -> vector<8x16xf32>
    %c0_13 = arith.constant 0 : index
    %c0_14 = arith.constant 0 : index
    %c0_15 = arith.constant 0 : index
    %c0_16 = arith.constant 0 : index
    %18 = vector.load %arg8[%c0_13, %c0_14, %c0_15, %c0_16] : memref<1x1x8x16xf32, #tpu.memory_space<vmem>>, vector<1x1x8x16xf32>
    %19 = vector.shape_cast %18 : vector<1x1x8x16xf32> to vector<8x16xf32>
    %20 = vector.shape_cast %17 : vector<8x16xf32> to vector<1x1x8x16xf32>
    tpu.vector_store %arg8[%c0_13, %c0_14, %c0_15, %c0_16], %20 {strides = array<i32>} : memref<1x1x8x16xf32, #tpu.memory_space<vmem>>, vector<1x1x8x16xf32>,
    %c0_i32 = arith.constant 0 : i32
    %21 = arith.cmpi eq, %arg1, %c0_i32 : i32
    %22 = arith.extui %21 : i1 to i32
    %c0_i32_17 = arith.constant 0 : i32
    %23 = arith.cmpi ne, %22, %c0_i32_17 : i32
    scf.if %23 {
      %cst_32 = arith.constant 0.000000e+00 : f32
      %41 = vector.broadcast %cst_32 : f32 to vector<1x8x1xf32>
      %c0_33 = arith.constant 0 : index
      %c0_34 = arith.constant 0 : index
      %c0_35 = arith.constant 0 : index
      %42 = vector.load %arg9[%c0_33, %c0_34, %c0_35] : memref<1x8x1xf32, #tpu.memory_space<vmem>>, vector<1x8x1xf32>
      tpu.vector_store %arg9[%c0_33, %c0_34, %c0_35], %41 {strides = array<i32>} : memref<1x8x1xf32, #tpu.memory_space<vmem>>, vector<1x8x1xf32>,
      %cst_36 = arith.constant 0.000000e+00 : f32
      %43 = vector.broadcast %cst_36 : f32 to vector<1x8x1xf32>
      %c0_37 = arith.constant 0 : index
      %c0_38 = arith.constant 0 : index
      %c0_39 = arith.constant 0 : index
      %44 = vector.load %arg10[%c0_37, %c0_38, %c0_39] : memref<1x8x1xf32, #tpu.memory_space<vmem>>, vector<1x8x1xf32>
      tpu.vector_store %arg10[%c0_37, %c0_38, %c0_39], %43 {strides = array<i32>} : memref<1x8x1xf32, #tpu.memory_space<vmem>>, vector<1x8x1xf32>,
    } else {
    }
    %c0_18 = arith.constant 0 : index
    %c0_19 = arith.constant 0 : index
    %c0_20 = arith.constant 0 : index
    %24 = vector.load %arg9[%c0_18, %c0_19, %c0_20] : memref<1x8x1xf32, #tpu.memory_space<vmem>>, vector<1x8x1xf32>
    %25 = vector.shape_cast %24 : vector<1x8x1xf32> to vector<8x1xf32>
    %cst_21 = arith.constant dense<0.000000e+00> : vector<8xf32>
    %26 = vector.multi_reduction <add>, %17, %cst_21 [1] : vector<8x16xf32> to vector<8xf32>
    %27 = vector.shape_cast %26 : vector<8xf32> to vector<8x1xf32>
    %28 = arith.addf %25, %27 : vector<8x1xf32>
    %c0_22 = arith.constant 0 : index
    %c0_23 = arith.constant 0 : index
    %c0_24 = arith.constant 0 : index
    %29 = vector.load %arg9[%c0_22, %c0_23, %c0_24] : memref<1x8x1xf32, #tpu.memory_space<vmem>>, vector<1x8x1xf32>
    %30 = vector.shape_cast %29 : vector<1x8x1xf32> to vector<8x1xf32>
    %31 = vector.shape_cast %28 : vector<8x1xf32> to vector<1x8x1xf32>
    tpu.vector_store %arg9[%c0_22, %c0_23, %c0_24], %31 {strides = array<i32>} : memref<1x8x1xf32, #tpu.memory_space<vmem>>, vector<1x8x1xf32>,
    %c0_25 = arith.constant 0 : index
    %c0_26 = arith.constant 0 : index
    %c0_27 = arith.constant 0 : index
    %32 = vector.load %arg10[%c0_25, %c0_26, %c0_27] : memref<1x8x1xf32, #tpu.memory_space<vmem>>, vector<1x8x1xf32>
    %33 = vector.shape_cast %32 : vector<1x8x1xf32> to vector<8x1xf32>
    %34 = arith.mulf %17, %17 : vector<8x16xf32>
    %cst_28 = arith.constant dense<0.000000e+00> : vector<8xf32>
    %35 = vector.multi_reduction <add>, %34, %cst_28 [1] : vector<8x16xf32> to vector<8xf32>
    %36 = vector.shape_cast %35 : vector<8xf32> to vector<8x1xf32>
    %37 = arith.addf %33, %36 : vector<8x1xf32>
    %c0_29 = arith.constant 0 : index
    %c0_30 = arith.constant 0 : index
    %c0_31 = arith.constant 0 : index
    %38 = vector.load %arg10[%c0_29, %c0_30, %c0_31] : memref<1x8x1xf32, #tpu.memory_space<vmem>>, vector<1x8x1xf32>
    %39 = vector.shape_cast %38 : vector<1x8x1xf32> to vector<8x1xf32>
    %40 = vector.shape_cast %37 : vector<8x1xf32> to vector<1x8x1xf32>
    tpu.vector_store %arg10[%c0_29, %c0_30, %c0_31], %40 {strides = array<i32>} : memref<1x8x1xf32, #tpu.memory_space<vmem>>, vector<1x8x1xf32>,
    return
  }
  func.func @transform_0(%arg0: i32, %arg1: i32) -> (i32, i32, i32, i32) {
    %c0_i32 = arith.constant 0 : i32
    %c0_i32_0 = arith.constant 0 : i32
    %c0_i32_1 = arith.constant 0 : i32
    return %arg0, %arg1, %c0_i32, %c0_i32_0 : i32, i32, i32, i32
  }
  func.func @transform_1(%arg0: i32, %arg1: i32) -> (i32, i32, i32, i32) {
    %c1_i32 = arith.constant 1 : i32
    %0 = arith.addi %arg1, %c1_i32 : i32
    %c0_i32 = arith.constant 0 : i32
    %c0_i32_0 = arith.constant 0 : i32
    %c0_i32_1 = arith.constant 0 : i32
    return %arg0, %0, %c0_i32, %c0_i32_0 : i32, i32, i32, i32
  }
  func.func @transform_2(%arg0: i32, %arg1: i32) -> (i32, i32, i32, i32) {
    %c2_i32 = arith.constant 2 : i32
    %0 = arith.addi %arg1, %c2_i32 : i32
    %c0_i32 = arith.constant 0 : i32
    %c0_i32_0 = arith.constant 0 : i32
    %c0_i32_1 = arith.constant 0 : i32
    return %arg0, %0, %c0_i32, %c0_i32_0 : i32, i32, i32, i32
  }
  func.func @transform_3(%arg0: i32, %arg1: i32) -> (i32, i32) {
    %c0_i32 = arith.constant 0 : i32
    %c0_i32_0 = arith.constant 0 : i32
    %c0_i32_1 = arith.constant 0 : i32
    return %c0_i32, %c0_i32_0 : i32, i32
  }
  func.func @transform_4(%arg0: i32, %arg1: i32) -> (i32, i32) {
    %c0_i32 = arith.constant 0 : i32
    %c0_i32_0 = arith.constant 0 : i32
    %c0_i32_1 = arith.constant 0 : i32
    return %c0_i32, %c0_i32_0 : i32, i32
  }
  func.func @transform_5(%arg0: i32, %arg1: i32) -> (i32, i32) {
    %c0_i32 = arith.constant 0 : i32
    %c0_i32_0 = arith.constant 0 : i32
    %c0_i32_1 = arith.constant 0 : i32
    return %c0_i32, %c0_i32_0 : i32, i32
  }
  func.func @transform_6(%arg0: i32, %arg1: i32) -> (i32, i32, i32, i32) {
    %c0_i32 = arith.constant 0 : i32
    %c0_i32_0 = arith.constant 0 : i32
    %c0_i32_1 = arith.constant 0 : i32
    return %arg0, %arg1, %c0_i32, %c0_i32_0 : i32, i32, i32, i32
  }
  func.func @transform_7(%arg0: i32, %arg1: i32) -> (i32, i32, i32) {
    %c0_i32 = arith.constant 0 : i32
    %c0_i32_0 = arith.constant 0 : i32
    %c0_i32_1 = arith.constant 0 : i32
    return %arg0, %c0_i32, %c0_i32_0 : i32, i32, i32
  }
  func.func @transform_8(%arg0: i32, %arg1: i32) -> (i32, i32, i32) {
    %c0_i32 = arith.constant 0 : i32
    %c0_i32_0 = arith.constant 0 : i32
    %c0_i32_1 = arith.constant 0 : i32
    return %arg0, %c0_i32, %c0_i32_0 : i32, i32, i32
  }
}

</mosaic_0001>

<bundles_post_ra>
// kernel: double_conv.5
= control target key start
LH: loop header
LB: loop body
LE: loop exit
PB: predicated region body
PF: predicated region fallthrough
CT: control target
= control target key end

     0   :  { %s474_s12 = smov 0   ;;  %s476_s13 = smov 0   ;;  %s586_s0 = inlined_call_operand.vmem [shape: f32[2,16,8,16], index: 0, kind: input, shape index: {}, may-alias: {0,3}]   ;;  %s587_s1 = inlined_call_operand.vmem [shape: f32[8,1], index: 1, kind: input, shape index: {}]   ;;  %s588_s2 = inlined_call_operand.vmem [shape: f32[8,1], index: 2, kind: input, shape index: {}]   ;;  %s589_s3 = inlined_call_operand.vmem [shape: f32[2,16,8,16], index: 3, kind: output, shape index: {}, may-alias: {0,3}]  }
   0x1   :  { %s478_s14 = smov 0  }
   0x2 LB: > { %s25_s15 = sadd.s32 1, %s447_s13  ;;  %p394_p0 = scmp.ge.s32.totalorder %s451_s14, 1  ;;  %s451_s14 = sphi %s478_s14, %s13_s14   ;;  %s447_s13 = sphi %s476_s13, %s591_s13   ;;  %s443_s12 = sphi %s474_s12, %s590_s12  }
   0x3   : > { %p27_p1 = scmp.ge.s32.totalorder %s25_s15, 2  ;;  %p158_p2 = scmp.lt.s32.totalorder %s451_s14, 3 }
   0x5   : > { %s593_s15 = smov (%p27_p1, %s25_s15), 0  ;;  %p159_p3 = pnand %p394_p0, %p158_p2 }
   0x6   : > { %p191_p4 = scmp.lt.s32.totalorder (!%p159_p3), %s443_s12, 1 }
   0x7   : > { %162 = sbr.rel (%p159_p3) target bundleno = 157 (0x9d), region = 32 }
   0xc   : > { %v226_v0 = vld [vmem:[%s587_s1] sm:$0xff]  ;;  %v453_v1 = vmov 0   ;;  %s595_s12 = smov (!%p191_p4, %s443_s12), 1  ;;  %vm286_vm0 = vcmask 130048  }
   0xd   : > { %428 = vset.pattern.permute.xlu0 %v453_v1  ;;  %v248_v2 = vld [vmem:[%s588_s2] sm:$0xff]  ;;  %s401_s20 = sshll.u32 %s595_s12, 7 }
   0xe   : > { %229 = vperm.xlu0 %428, %v226_v0   ;;  %s506_s23 = scalar_lea.vmem %s586_s0, %s401_s20  ;;  %s528_s26 = scalar_lea.vmem %s589_s3, %s401_s20 }
   0xf   : > { %v210_v4 = vld [vmem:[%s506_s23] sm:$0xff]  ;;  %v211_v5 = vld [vmem:[%s506_s23 + $0x8] sm:$0xff]  ;;  %v212_v6 = vld [vmem:[%s506_s23 + $0x10] sm:$0xff] }
  0x10   : > { %v213_v7 = vld [vmem:[%s506_s23 + $0x18] sm:$0xff]  ;;  %v214_v8 = vld [vmem:[%s506_s23 + $0x20] sm:$0xff]  ;;  %v215_v9 = vld [vmem:[%s506_s23 + $0x28] sm:$0xff] }
  0x11   : > { %v216_v14 = vld [vmem:[%s506_s23 + $0x30] sm:$0xff]  ;;  %v217_v16 = vld [vmem:[%s506_s23 + $0x38] sm:$0xff]  ;;  %v218_v17 = vld [vmem:[%s506_s23 + $0x40] sm:$0xff] }
  0x12   : > { %v219_v24 = vld [vmem:[%s506_s23 + $0x48] sm:$0xff]  ;;  %v220_v27 = vld [vmem:[%s506_s23 + $0x50] sm:$0xff]  ;;  %v221_v31 = vld [vmem:[%s506_s23 + $0x58] sm:$0xff] }
  0x13   : > { %v222_v32 = vld [vmem:[%s506_s23 + $0x60] sm:$0xff]  ;;  %v223_v37 = vld [vmem:[%s506_s23 + $0x68] sm:$0xff]  ;;  %v224_v38 = vld [vmem:[%s506_s23 + $0x70] sm:$0xff] }
  0x14   : > { %v225_v39 = vld [vmem:[%s506_s23 + $0x78] sm:$0xff] }
  0x16   : > { %251 = vperm.xlu0 %428, %v248_v2  }
  0x80   : > { %v501_v3 = vpop.permute.xlu0 %229 }
  0x81   : > { %v232_v10 = vmul.f32 %v501_v3, %v210_v4  ;;  %v233_v11 = vmul.f32 %v501_v3, %v211_v5  ;;  %v234_v12 = vmul.f32 %v501_v3, %v212_v6  ;;  %v235_v15 = vmul.f32 %v501_v3, %v213_v7 }
  0x82   : > { %v236_v18 = vmul.f32 %v501_v3, %v214_v8  ;;  %v237_v22 = vmul.f32 %v501_v3, %v215_v9  ;;  %v238_v25 = vmul.f32 %v501_v3, %v216_v14  ;;  %v239_v28 = vmul.f32 %v501_v3, %v217_v16 }
  0x83   : > { %v240_v29 = vmul.f32 %v501_v3, %v218_v17  ;;  %v241_v40 = vmul.f32 %v501_v3, %v219_v24  ;;  %v242_v43 = vmul.f32 %v501_v3, %v220_v27  ;;  %v243_v46 = vmul.f32 %v501_v3, %v221_v31 }
  0x84   : > { %v244_v49 = vmul.f32 %v501_v3, %v222_v32  ;;  %v245_v52 = vmul.f32 %v501_v3, %v223_v37  ;;  %v246_v55 = vmul.f32 %v501_v3, %v224_v38  ;;  %v247_v58 = vmul.f32 %v501_v3, %v225_v39 }
  0x88   : > { %v252_v13 = vpop.permute.xlu0 %251 }
  0x89   : > { %v254_v19 = vadd.f32 %v252_v13, %v232_v10  ;;  %v255_v20 = vadd.f32 %v252_v13, %v233_v11  ;;  %v256_v21 = vadd.f32 %v252_v13, %v234_v12  ;;  %v257_v23 = vadd.f32 %v252_v13, %v235_v15 }
  0x8a   : > { %v258_v26 = vadd.f32 %v252_v13, %v236_v18  ;;  %v259_v30 = vadd.f32 %v252_v13, %v237_v22  ;;  %v260_v33 = vadd.f32 %v252_v13, %v238_v25  ;;  %v261_v41 = vadd.f32 %v252_v13, %v239_v28 }
  0x8b   : > { %v270_v34 = vmax.f32 %v254_v19, 0.0  ;;  %v271_v35 = vmax.f32 %v255_v20, 0.0  ;;  %v272_v36 = vmax.f32 %v256_v21, 0.0  ;;  %v273_v42 = vmax.f32 %v257_v23, 0.0 }
  0x8c   : > { %v262_v44 = vadd.f32 %v252_v13, %v240_v29  ;;  %v274_v45 = vmax.f32 %v258_v26, 0.0  ;;  %v263_v47 = vadd.f32 %v252_v13, %v241_v40  ;;  %v275_v48 = vmax.f32 %v259_v30, 0.0 }
  0x8d   : > { %287 = vst.msk [vmem:[%s528_s26] sm:$0xff] %vm286_vm0, %v270_v34  ;;  %v264_v50 = vadd.f32 %v252_v13, %v242_v43  ;;  %v276_v51 = vmax.f32 %v260_v33, 0.0  ;;  %v265_v53 = vadd.f32 %v252_v13, %v243_v46  ;;  %v277_v54 = vmax.f32 %v261_v41, 0.0 }
  0x8e   : > { %288 = vst.msk [vmem:[%s528_s26 + $0x8] sm:$0xff] %vm286_vm0, %v271_v35  ;;  %v266_v56 = vadd.f32 %v252_v13, %v244_v49  ;;  %v278_v57 = vmax.f32 %v262_v44, 0.0  ;;  %v267_v59 = vadd.f32 %v252_v13, %v245_v52  ;;  %v279_v60 = vmax.f32 %v263_v47, 0.0 }
  0x8f   : > { %289 = vst.msk [vmem:[%s528_s26 + $0x10] sm:$0xff] %vm286_vm0, %v272_v36  ;;  %v268_v61 = vadd.f32 %v252_v13, %v246_v55  ;;  %v280_v62 = vmax.f32 %v264_v50, 0.0  ;;  %v269_v63 = vadd.f32 %v252_v13, %v247_v58  ;;  %v281_v0 = vmax.f32 %v265_v53, 0.0 }
  0x90   : > { %290 = vst.msk [vmem:[%s528_s26 + $0x18] sm:$0xff] %vm286_vm0, %v273_v42  ;;  %v282_v1 = vmax.f32 %v266_v56, 0.0  ;;  %v283_v2 = vmax.f32 %v267_v59, 0.0 }
  0x91   : > { %291 = vst.msk [vmem:[%s528_s26 + $0x20] sm:$0xff] %vm286_vm0, %v274_v45  ;;  %v284_v3 = vmax.f32 %v268_v61, 0.0  ;;  %v285_v4 = vmax.f32 %v269_v63, 0.0 }
  0x92   : > { %292 = vst.msk [vmem:[%s528_s26 + $0x28] sm:$0xff] %vm286_vm0, %v275_v48 }
  0x93   : > { %293 = vst.msk [vmem:[%s528_s26 + $0x30] sm:$0xff] %vm286_vm0, %v276_v51 }
  0x94   : > { %294 = vst.msk [vmem:[%s528_s26 + $0x38] sm:$0xff] %vm286_vm0, %v277_v54 }
  0x95   : > { %295 = vst.msk [vmem:[%s528_s26 + $0x40] sm:$0xff] %vm286_vm0, %v278_v57 }
  0x96   : > { %296 = vst.msk [vmem:[%s528_s26 + $0x48] sm:$0xff] %vm286_vm0, %v279_v60 }
  0x97   : > { %297 = vst.msk [vmem:[%s528_s26 + $0x50] sm:$0xff] %vm286_vm0, %v280_v62 }
  0x98   : > { %298 = vst.msk [vmem:[%s528_s26 + $0x58] sm:$0xff] %vm286_vm0, %v281_v0 }
  0x99   : > { %299 = vst.msk [vmem:[%s528_s26 + $0x60] sm:$0xff] %vm286_vm0, %v282_v1 }
  0x9a   : > { %300 = vst.msk [vmem:[%s528_s26 + $0x68] sm:$0xff] %vm286_vm0, %v283_v2 }
  0x9b   : > { %301 = vst.msk [vmem:[%s528_s26 + $0x70] sm:$0xff] %vm286_vm0, %v284_v3 }
  0x9c   : > { %302 = vst.msk [vmem:[%s528_s26 + $0x78] sm:$0xff] %vm286_vm0, %v285_v4 }
  0x9d PF: > { %s13_s14 = sadd.s32 1, %s451_s14   ;;  %s590_s12 = smov %s447_s13 }
  0x9e   : > { %p10_p5 = scmp.ge.s32.totalorder %s13_s14, 4   ;;  %s591_s13 = smov %s593_s15 }
  0xa0   :  { %12 = sbr.rel (!%p10_p5) target bundleno = 2 (0x2), region = 62 }

// kernel: double_conv.4
= control target key start
LH: loop header
LB: loop body
LE: loop exit
PB: predicated region body
PF: predicated region fallthrough
CT: control target
= control target key end

     0   :  { %s885_s27 = smov 0   ;;  %s887_s28 = smov 0   ;;  %s986_s0 = inlined_call_operand.vmem [shape: f32[2,18,8,18], index: 0, kind: input, shape index: {}, may-alias: {0,1,2}]   ;;  %s987_s1 = inlined_call_operand.vmem [shape: f32[2,18,8,18], index: 1, kind: input, shape index: {}, may-alias: {0,1,2}]   ;;  %s988_s2 = inlined_call_operand.vmem [shape: f32[2,18,8,18], index: 2, kind: input, shape index: {}, may-alias: {0,1,2}]   ;;  %s989_s3 = inlined_call_operand.vmem [shape: f32[8,72], index: 3, kind: input, shape index: {}]   ;;  %s990_s4 = inlined_call_operand.vmem [shape: f32[8,1], index: 4, kind: input, shape index: {}]   ;;  %s991_s5 = inlined_call_operand.vmem [shape: f32[8,1], index: 5, kind: input, shape index: {}]   ;;  %s992_s6 = inlined_call_operand.vmem [shape: f32[2,16,8,16], index: 6, kind: output, shape index: {0}]   ;;  %s993_s7 = inlined_call_operand.vmem [shape: f32[2,8,1], index: 7, kind: output, shape index: {1}]   ;;  %s994_s8 = inlined_call_operand.vmem [shape: f32[2,8,1], index: 8, kind: output, shape index: {2}]  }
   0x1   :  { %995 = sst [smem:[#allocation2_spill]] %s990_s4  ;;  %s889_s29 = smov 0  }
   0x2   :  { %996 = sst [smem:[#allocation3_spill]] %s991_s5  ;;  %s891_s30 = smov 0  }
   0x3   :  { %997 = sst [smem:[#allocation4_spill]] %s993_s7  ;;  %s893_s9 = smov 0  }
   0x4   :  { %998 = sst [smem:[#allocation5_spill]] %s994_s8 }
   0x5 LB: > { %s28_s10 = sadd.s32 1, %s825_s29  ;;  %s31_s11 = sadd.s32 1, %s829_s30  ;;  %s833_s9 = sphi %s893_s9, %s19_s9   ;;  %s829_s30 = sphi %s891_s30, %s1006_s30   ;;  %s825_s29 = sphi %s889_s29, %s1005_s29   ;;  %s821_s28 = sphi %s887_s28, %s1004_s28   ;;  %s817_s27 = sphi %s885_s27, %s1003_s27  }
   0x6   : > { %p29_p0 = scmp.ge.s32.totalorder %s28_s10, 16  ;;  %p735_p1 = scmp.ge.s32.totalorder %s833_s9, 1 }
   0x7   : > { %p324_p2 = scmp.lt.s32.totalorder %s833_s9, 33 }
   0x8   : > { %s1008_s10 = smov (%p29_p0, %s28_s10), 0  ;;  %s1010_s11 = smov (!%p29_p0, %s31_s11), %s829_s30 }
   0x9   : > { %p325_p3 = pnand %p735_p1, %p324_p2  ;;  %p33_p4 = scmp.ge.s32.totalorder %s1010_s11, 2 }
   0xa   : > { %s999_s4 = sld [smem:[#allocation2_spill]] (!%p325_p3)  ;;  %p390_p5 = scmp.lt.s32.totalorder (!%p325_p3), %s821_s28, 1 }
   0xb   : > { %s1012_s11 = smov (%p33_p4, %s1010_s11), 0  ;;  %328 = sbr.rel (%p325_p3) target bundleno = 545 (0x221), region = 44 }
   0xc   : > { %s1000_s7 = sld [smem:[#allocation4_spill]] (!%p325_p3)  ;;  %s398_s23 = sadd.s32 (!%p325_p3), 1, %s817_s27 }
   0xd   : > { %s1001_s5 = sld [smem:[#allocation3_spill]] (!%p325_p3)  ;;  %p392_p6 = scmp.lt.s32.totalorder (!%p325_p3), %s817_s27, 17 }
   0xe   : > { %s1002_s8 = sld [smem:[#allocation5_spill]] (!%p325_p3)  ;;  %s408_s24 = sadd.s32 (!%p325_p3), 2, %s817_s27 }
   0xf   : > { %p401_p7 = scmp.lt.s32.totalorder (!%p325_p3), %s398_s23, 17  ;;  %p411_p8 = scmp.lt.s32.totalorder (!%p325_p3), %s408_s24, 17 }
  0x10   : > { %v448_v0 = vld [vmem:[%s999_s4] sm:$0xff]  ;;  %v835_v1 = vmov 0   ;;  %s1014_s28 = smov (!%p390_p5, %s821_s28), 1  ;;  %v434_v3 = vlaneseq  ;;  %p420_p9 = scmp.lt.s32.totalorder %s817_s27, 15  ;;  %v836_v16 = vmov 0.0   ;;  %vm500_vm3 = vcmask 588800  }
  0x11   : > { %794 = vset.pattern.permute.xlu0 %v835_v1  ;;  %s741_s14 = sshll.u32 %s1014_s28, 3  ;;  %s748_s26 = smul.u32 18, %s1014_s28  ;;  %v499_v34 = vld [vmem:[%s989_s3] sm:$0xff]  ;;  %vm524_vm4 = vcmask 130048  }
  0x12   : > { %451 = vperm.xlu0 %794, %v448_v0   ;;  %s926_s17 = scalar_lea.vmem %s1000_s7, %s741_s14  ;;  %s1016_s23 = smov (!%p401_p7, %s398_s23), 17  ;;  %v435_v5 = vand.u32 127, %v434_v3 }
  0x13   : > { %v455_v2 = vld [vmem:[%s1001_s5] sm:$0xff]  ;;  %s393_s25 = scalar_select %p392_p6, %s817_s27, 17 }
  0x14   : > { %s934_s22 = scalar_lea.vmem %s1002_s8, %s741_s14  ;;  %s1018_s24 = smov (!%p411_p8, %s408_s24), 17  ;;  %vm436_vm0 = vcmp.ge.s32.totalorder %v435_v5, 1  ;;  %vm437_vm1 = vcmp.le.s32.totalorder %v435_v5, 16 }
  0x15   : > { %s395_s12 = sadd.s32 %s748_s26, %s393_s25  ;;  %s404_s13 = sadd.s32 %s748_s26, %s1016_s23  ;;  %vm438_vm2 = vmand %vm436_vm0, %vm437_vm1 }
  0x16   : > { %s414_s15 = sadd.s32 %s748_s26, %s1018_s24  ;;  %s736_s16 = sshll.u32 %s395_s12, 3  ;;  %v743_v17 = vsel %vm438_vm2, 1.0, %v836_v16 }
  0x17   : > { %s737_s14 = sshll.u32 %s404_s13, 3  ;;  %s738_s18 = sshll.u32 %s414_s15, 3 }
  0x18   : > { %p441_p10 = scmp.gt.s32.totalorder %s817_s27, 0  ;;  %s397_s21 = scalar_lea.vmem %s986_s0, %s736_s16 }
  0x19   : > { %s406_s7 = scalar_lea.vmem %s987_s1, %s737_s14  ;;  %s416_s23 = scalar_lea.vmem %s988_s2, %s738_s18  ;;  %v447_v6 = vld [vmem:[%s397_s21] sm:$0xff] }
  0x1a   : > { %458 = vperm.xlu0 %794, %v455_v2   ;;  %s445_s24 = scalar_select %p420_p9, 1, 0  ;;  %v466_v7 = vld [vmem:[%s406_s7] sm:$0xff] }
  0x1b   : > { %s442_s26 = scalar_select %p441_p10, 1, 0  ;;  %v471_v8 = vld [vmem:[%s416_s23] sm:$0xff] }
  0x1c   : > { %s446_s12 = scvt.s32.f32 %s445_s24  ;;  %s837_s5 = smov 126  }
  0x1d   : > { %s443_s4 = scvt.s32.f32 %s442_s26  ;;  %s838_s7 = smov 127  }
  0x1e   : > { %v476_v21 = vstv %s446_s12  ;;  %s421_s15 = scalar_select %p420_p9, %s817_s27, 15 }
  0x1f   : > { %v464_v22 = vstv %s443_s4  ;;  %s739_s16 = sshll.u32 %s1014_s28, 4  ;;  %p745_p11 = scmp.ne.s32.totalorder %s817_s27, 0 }
  0x20   : > { %s423_s14 = sadd.s32 %s739_s16, %s421_s15 }
  0x21   : > { %s740_s18 = sshll.u32 %s423_s14, 3 }
  0x22   : > { %s425_s21 = scalar_lea.vmem %s992_s6, %s740_s18 }
  0x84   : > { %v452_v4 = vpop.permute.xlu0 %451 }
  0x85   : > { %v454_v9 = vmul.f32 %v452_v4, %v447_v6  ;;  %v467_v10 = vmul.f32 %v466_v7, %v452_v4  ;;  %v472_v11 = vmul.f32 %v471_v8, %v452_v4 }
  0x8c   : > { %v459_v12 = vpop.permute.xlu0 %458 }
  0x8d   : > { %v461_v13 = vadd.f32 %v459_v12, %v454_v9  ;;  %v468_v14 = vadd.f32 %v467_v10, %v459_v12  ;;  %v473_v15 = vadd.f32 %v472_v11, %v459_v12 }
  0x8f   : > { %v462_v18 = vmax.f32 %v461_v13, 0.0  ;;  %v469_v19 = vmax.f32 %v468_v14, 0.0  ;;  %v474_v20 = vmax.f32 %v473_v15, 0.0 }
  0x91   : > { %v470_v23 = vmul.f32 %v743_v17, %v469_v19  ;;  %v475_v24 = vmul.f32 %v743_v17, %v474_v20  ;;  %v463_v25 = vmul.f32 %v743_v17, %v462_v18 }
  0x93   : > { %489 = vrot.lane.b32.xlu2 %v470_v23, %s837_s5  ;;  %v477_v26 = vmul.f32 %v476_v21, %v475_v24  ;;  %v465_v27 = vmul.f32 %v464_v22, %v463_v25 }
  0x95   : > { %496 = vrot.lane.b32.xlu1 %v477_v26, %s837_s5  ;;  %482 = vrot.lane.b32.xlu0 %v465_v27, %s837_s5 }
  0x9b   : > { %486 = vrot.lane.b32.xlu2 %v470_v23, %s838_s7 }
  0x9d   : > { %493 = vrot.lane.b32.xlu1 %v477_v26, %s838_s7 }
  0xa5   : > { %479 = vrot.lane.b32.xlu1 %v465_v27, %s838_s7 }
  0xed   : > { %v490_v29 = vpop.permute.xlu2 %489 }
  0xf5   : > { %v487_v31 = vpop.permute.xlu2 %486 }
 0x107   : > { %v497_v28 = vpop.permute.xlu1 %496  ;;  %v483_v32 = vpop.permute.xlu0 %482 }
 0x108   : > { %511 = vmatpush.msra.mxu0 %v497_v28 }
 0x10f   : > { %v494_v30 = vpop.permute.xlu1 %493 }
 0x110   : > { %512 = vmatpush.msra.mxu0 %v494_v30 }
 0x112   : > { %513 = vmatpush.msra.mxu0 %v477_v26 }
 0x114   : > { %514 = vmatpush.msra.mxu0 %v490_v29 }
 0x116   : > { %515 = vmatpush.msra.mxu0 %v487_v31 }
 0x117   : > { %v480_v33 = vpop.permute.xlu1 %479 }
 0x118   : > { %516 = vmatpush.msra.mxu0 %v470_v23 }
 0x11a   : > { %517 = vmatpush.msra.mxu0 %v483_v32 }
 0x11c   : > { %518 = vmatpush.msra.mxu0 %v480_v33 }
 0x11e   : > { %519 = vmatpush.msra.mxu0 %v465_v27 }
 0x11f   : > { %744 = vmatmul.msk.f32.vlgmr.msra.gmra.mxu0 %vm500_vm3, %v499_v34 }
 0x199   : > { %529 = sbr.rel (%p745_p11) target bundleno = 417 (0x1a1), region = 48 }
 0x19c   : > { %v521_v35 = vpop.f32.mrf.mxu0 }
 0x19d   : > { %525 = vst.msk [vmem:[%s425_s21] sm:$0xff] %vm524_vm4, %v521_v35 }
 0x19e   : > { %vm530_vm5 = vcmask 7168   ;;  %v839_v36 = vmov 0.0  }
 0x19f   : > { %531 = vst.msk [vmem:[%s926_s17] sm:$0xff] %vm530_vm5, %v839_v36 }
 0x1a0   : > { %532 = vst.msk [vmem:[%s934_s22] sm:$0xff] %vm530_vm5, %v839_v36 }
 0x1a1 PF: > { %v534_v37 = vsel %vm524_vm4, %v521_v35, 0.0  ;;  %v541_v38 = vmul.f32 %v521_v35, %v521_v35  ;;  %vm538_vm6 = vcmask 7168  }
 0x1a2   : > { %535 = vadd.xlane.f32.xlu0 %v534_v37 }
 0x1a3   : > { %v542_v39 = vsel %vm524_vm4, %v541_v38, 0.0 }
 0x1a6   : > { %v533_v40 = vld [vmem:[%s926_s17] sm:$0xff] }
 0x1a7   : > { %v540_v43 = vld [vmem:[%s934_s22] sm:$0xff] }
 0x1aa   : > { %543 = vadd.xlane.f32.xlu0 %v542_v39 }
 0x215   : > { %v536_v41 = vpop.xlane.xlu0 %535 }
 0x216   : > { %v537_v42 = vadd.f32 %v536_v41, %v533_v40 }
 0x218   : > { %539 = vst.msk [vmem:[%s926_s17] sm:$0xff] %vm538_vm6, %v537_v42 }
 0x21d   : > { %v544_v44 = vpop.xlane.xlu0 %543 }
 0x21e   : > { %v545_v45 = vadd.f32 %v544_v44, %v540_v43 }
 0x220   : > { %546 = vst.msk [vmem:[%s934_s22] sm:$0xff] %vm538_vm6, %v545_v45 }
 0x221 PF: > { %s19_s9 = sadd.s32 1, %s833_s9   ;;  %s1003_s27 = smov %s825_s29 }
 0x222   : > { %p16_p12 = scmp.ge.s32.totalorder %s19_s9, 34   ;;  %s1004_s28 = smov %s829_s30 }
 0x223   : > { %s1005_s29 = smov %s1008_s10  ;;  %s1006_s30 = smov %s1012_s11 }
 0x224   :  { %18 = sbr.rel (!%p16_p12) target bundleno = 5 (0x5), region = 108 }

// kernel: double_conv.3
= control target key start
LH: loop header
LB: loop body
LE: loop exit
PB: predicated region body
PF: predicated region fallthrough
CT: control target
= control target key end

     0   :  { %s859_s27 = smov 0   ;;  %s861_s28 = smov 0   ;;  %s954_s0 = inlined_call_operand.vmem [shape: f32[2,18,4,18], index: 0, kind: input, shape index: {}, may-alias: {0,1,2}]   ;;  %s955_s1 = inlined_call_operand.vmem [shape: f32[2,18,4,18], index: 1, kind: input, shape index: {}, may-alias: {0,1,2}]   ;;  %s956_s2 = inlined_call_operand.vmem [shape: f32[2,18,4,18], index: 2, kind: input, shape index: {}, may-alias: {0,1,2}]   ;;  %s957_s3 = inlined_call_operand.vmem [shape: f32[8,36], index: 3, kind: input, shape index: {}]   ;;  %s958_s4 = inlined_call_operand.vmem [shape: f32[4,1], index: 4, kind: input, shape index: {}]   ;;  %s959_s5 = inlined_call_operand.vmem [shape: f32[4,1], index: 5, kind: input, shape index: {}]   ;;  %s960_s6 = inlined_call_operand.vmem [shape: f32[2,16,8,16], index: 6, kind: output, shape index: {0}]   ;;  %s961_s7 = inlined_call_operand.vmem [shape: f32[2,8,1], index: 7, kind: output, shape index: {1}]   ;;  %s962_s8 = inlined_call_operand.vmem [shape: f32[2,8,1], index: 8, kind: output, shape index: {2}]  }
   0x1   :  { %s863_s29 = smov 0   ;;  %s865_s30 = smov 0  }
   0x2   :  { %s867_s4 = smov 0  }
   0x3 LB: > { %s28_s5 = sadd.s32 1, %s801_s29  ;;  %s31_s9 = sadd.s32 1, %s805_s30  ;;  %s809_s4 = sphi %s867_s4, %s19_s4   ;;  %s805_s30 = sphi %s865_s30, %s966_s30   ;;  %s801_s29 = sphi %s863_s29, %s965_s29   ;;  %s797_s28 = sphi %s861_s28, %s964_s28   ;;  %s793_s27 = sphi %s859_s27, %s963_s27  }
   0x4   : > { %p29_p0 = scmp.ge.s32.totalorder %s28_s5, 16  ;;  %p704_p1 = scmp.ge.s32.totalorder %s809_s4, 1 }
   0x5   : > { %p324_p2 = scmp.lt.s32.totalorder %s809_s4, 33 }
   0x6   : > { %s968_s5 = smov (%p29_p0, %s28_s5), 0  ;;  %s970_s9 = smov (!%p29_p0, %s31_s9), %s805_s30 }
   0x7   : > { %p325_p3 = pnand %p704_p1, %p324_p2  ;;  %p33_p4 = scmp.ge.s32.totalorder %s970_s9, 2 }
   0x8   : > { %p390_p5 = scmp.lt.s32.totalorder (!%p325_p3), %s797_s28, 1  ;;  %s408_s10 = sadd.s32 (!%p325_p3), 2, %s793_s27 }
   0x9   : > { %s972_s9 = smov (%p33_p4, %s970_s9), 0  ;;  %328 = sbr.rel (%p325_p3) target bundleno = 412 (0x19c), region = 44 }
   0xa   : > { %p411_p6 = scmp.lt.s32.totalorder (!%p325_p3), %s408_s10, 17  ;;  %s398_s20 = sadd.s32 (!%p325_p3), 1, %s793_s27 }
   0xb   : > { %p401_p7 = scmp.lt.s32.totalorder (!%p325_p3), %s398_s20, 17  ;;  %s811_s25 = smov (!%p325_p3), 126  }
   0xc   : > { %p392_p8 = scmp.lt.s32.totalorder (!%p325_p3), %s793_s27, 17  ;;  %s812_s22 = smov (!%p325_p3), 127  }
   0xd   : > { %p420_p9 = scmp.lt.s32.totalorder (!%p325_p3), %s793_s27, 15  ;;  %p714_p10 = scmp.ne.s32.totalorder (!%p325_p3), %s793_s27, 0 }
   0xe   : > { %s974_s28 = smov (!%p390_p5, %s797_s28), 1  ;;  %s976_s10 = smov (!%p411_p6, %s408_s10), 17  ;;  %vm461_vm0 = vcmask 1043456   ;;  %v466_v19 = vld [vmem:[%s957_s3] sm:$0xff]  ;;  %vm467_vm1 = vcmask 293888   ;;  %vm493_vm2 = vcmask 130048  }
   0xf   : > { %s717_s11 = smul.u32 18, %s974_s28  ;;  %s710_s12 = sshll.u32 %s974_s28, 3 }
  0x10   : > { %s899_s15 = scalar_lea.vmem %s961_s7, %s710_s12  ;;  %s904_s18 = scalar_lea.vmem %s962_s8, %s710_s12 }
  0x11   : > { %s414_s19 = sadd.s32 %s717_s11, %s976_s10  ;;  %s978_s20 = smov (!%p401_p7, %s398_s20), 17 }
  0x12   : > { %s707_s21 = sshll.u32 %s414_s19, 2  ;;  %s404_s26 = sadd.s32 %s717_s11, %s978_s20 }
  0x13   : > { %s416_s24 = scalar_lea.vmem %s956_s2, %s707_s21  ;;  %s706_s13 = sshll.u32 %s404_s26, 2 }
  0x14   : > { %v436_v0 = vld [vmem:[%s416_s24] sm:$0xf]  ;;  %s406_s16 = scalar_lea.vmem %s955_s1, %s706_s13  ;;  %s708_s26 = sshll.u32 %s974_s28, 4 }
  0x15   : > { %459 = vrot.lane.b32.xlu0 %v436_v0, %s811_s25  ;;  %v455_v1 = vrot.slane %v436_v0, 4  ;;  %v435_v2 = vld [vmem:[%s406_s16] sm:$0xf]  ;;  %s393_s10 = scalar_select %p392_p8, %s793_s27, 17 }
  0x16   : > { %v446_v4 = vrot.slane %v435_v2, 4 }
  0x17   : > { %v761_v3 = vpack.i.bf16 %v435_v2, %v455_v1  ;;  %s395_s17 = sadd.s32 %s717_s11, %s393_s10 }
  0x18   : > { %s705_s19 = sshll.u32 %s395_s17, 2 }
  0x19   : > { %s397_s24 = scalar_lea.vmem %s954_s0, %s705_s19 }
  0x1a   : > { %v434_v5 = vld [vmem:[%s397_s24] sm:$0xf] }
  0x1b   : > { %v766_v6 = vpack.i.bf16 %v434_v5, %v446_v4  ;;  %v438_v7 = vrot.slane %v434_v5, 4 }
  0x1d   : > { %762 = vrot.lane.b32.xlu0 %v761_v3, %s812_s22  ;;  %767 = vrot.lane.b32.xlu1 %v766_v6, %s811_s25  ;;  %s421_s25 = scalar_select %p420_p9, %s793_s27, 15 }
  0x1f   : > { %s423_s13 = sadd.s32 %s708_s26, %s421_s25 }
  0x20   : > { %s709_s14 = sshll.u32 %s423_s13, 3 }
  0x21   : > { %s425_s10 = scalar_lea.vmem %s960_s6, %s709_s14 }
  0x25   : > { %439 = vrot.lane.b32.xlu1 %v438_v7, %s812_s22 }
  0x87   : > { %v460_v8 = vpop.permute.xlu0 %459 }
  0x88   : > { %712 = vmatpush.msk.msra.mxu0 %vm461_vm0, %v460_v8 }
  0x8f   : > { %v763_v9 = vpop.permute.xlu0 %762  ;;  %v768_v13 = vpop.permute.xlu1 %767 }
  0x90   : > { %v764_v10 = vunpack.i.l.bf16 %v763_v9  ;;  %v765_v11 = vunpack.i.h.bf16 %v763_v9  ;;  %v770_v14 = vunpack.i.h.bf16 %v768_v13  ;;  %v769_v15 = vunpack.i.l.bf16 %v768_v13 }
  0x92   : > { %v465_v12 = vsel %vm461_vm0, %v436_v0, %v764_v10  ;;  %v464_v16 = vsel %vm461_vm0, %v765_v11, %v769_v15  ;;  %v463_v17 = vsel %vm461_vm0, %v770_v14, %v446_v4 }
  0x93   : > { %485 = vmatpush.msra.mxu0 %v465_v12 }
  0x95   : > { %486 = vmatpush.msra.mxu0 %v464_v16 }
  0x97   : > { %487 = vmatpush.msra.mxu0 %v463_v17  ;;  %v440_v18 = vpop.permute.xlu1 %439 }
  0x98   : > { %v462_v20 = vsel %vm461_vm0, %v434_v5, %v440_v18 }
  0x99   : > { %488 = vmatpush.msra.mxu0 %v462_v20 }
  0x9a   : > { %713 = vmatmul.msk.f32.vlgmr.msra.gmra.mxu0 %vm467_vm1, %v466_v19 }
 0x114   : > { %498 = sbr.rel (%p714_p10) target bundleno = 284 (0x11c), region = 48 }
 0x117   : > { %v490_v21 = vpop.f32.mrf.mxu0 }
 0x118   : > { %494 = vst.msk [vmem:[%s425_s10] sm:$0xff] %vm493_vm2, %v490_v21 }
 0x119   : > { %vm499_vm3 = vcmask 7168   ;;  %v813_v22 = vmov 0.0  }
 0x11a   : > { %500 = vst.msk [vmem:[%s899_s15] sm:$0xff] %vm499_vm3, %v813_v22 }
 0x11b   : > { %501 = vst.msk [vmem:[%s904_s18] sm:$0xff] %vm499_vm3, %v813_v22 }
 0x11c PF: > { %v503_v23 = vsel %vm493_vm2, %v490_v21, 0.0  ;;  %v510_v24 = vmul.f32 %v490_v21, %v490_v21  ;;  %vm507_vm4 = vcmask 7168  }
 0x11d   : > { %504 = vadd.xlane.f32.xlu0 %v503_v23 }
 0x11e   : > { %v511_v25 = vsel %vm493_vm2, %v510_v24, 0.0 }
 0x121   : > { %v502_v26 = vld [vmem:[%s899_s15] sm:$0xff] }
 0x122   : > { %v509_v29 = vld [vmem:[%s904_s18] sm:$0xff] }
 0x125   : > { %512 = vadd.xlane.f32.xlu0 %v511_v25 }
 0x190   : > { %v505_v27 = vpop.xlane.xlu0 %504 }
 0x191   : > { %v506_v28 = vadd.f32 %v505_v27, %v502_v26 }
 0x193   : > { %508 = vst.msk [vmem:[%s899_s15] sm:$0xff] %vm507_vm4, %v506_v28 }
 0x198   : > { %v513_v30 = vpop.xlane.xlu0 %512 }
 0x199   : > { %v514_v31 = vadd.f32 %v513_v30, %v509_v29 }
 0x19b   : > { %515 = vst.msk [vmem:[%s904_s18] sm:$0xff] %vm507_vm4, %v514_v31 }
 0x19c PF: > { %s19_s4 = sadd.s32 1, %s809_s4   ;;  %s963_s27 = smov %s801_s29 }
 0x19d   : > { %p16_p11 = scmp.ge.s32.totalorder %s19_s4, 34   ;;  %s964_s28 = smov %s805_s30 }
 0x19e   : > { %s965_s29 = smov %s968_s5  ;;  %s966_s30 = smov %s972_s9 }
 0x19f   :  { %18 = sbr.rel (!%p16_p11) target bundleno = 3 (0x3), region = 108 }

</bundles_post_ra>
